<compile_context>
chip_gen: v6e
topology: v6e:2x2x1
jax: 0.10.0
libtpu: 0.0.40
codegen_flags: <defaults>
</compile_context>

<pallas_src>
import functools

import jax
import jax.numpy as jnp
from jax.experimental import pallas as pl
from jax.experimental.pallas import tpu as pltpu

_LANE = 128     # TPU lane width (last dim)
_SUBLANE = 8    # f32 sublane granularity (second-to-last dim)


def _round_up(v, m):
    return ((v + m - 1) // m) * m


# --------------------------------------------------------------------------
# Weight construction (hoisted: build ONCE per model, reuse every call/step).
# --------------------------------------------------------------------------

def build_ode_weight(A, B, dtype=jnp.float32):
    """W = [A^T ; B^T], zero-padded on the output (lane) axis to a multiple of
    128 so kernel stores are unmasked.

    A: (nx, nx), B: (nx, nu)  ->  W: (nx + nu, round_up(nx, 128))
    dtype=jnp.bfloat16 halves W's HBM traffic and uses the native bf16 MXU
    path on v5e (accumulation stays f32 in the kernel).
    """
    nx = A.shape[0]
    W = jnp.concatenate([A.T, B.T], axis=0).astype(dtype)   # (insize, nx)
    nx_pad = _round_up(nx, _LANE)
    if nx_pad != nx:
        W = jnp.pad(W, ((0, 0), (0, nx_pad - nx)))
    return W


def build_euler_weight(A, B, dtype=jnp.float32):
    """Augmented weight for the fused Euler rollout on z = [x_state | u]:
        z @ Waug = [A x_state + B u, 0, ..., 0]
    so z_{k+1} = z_k + h * (z_k @ Waug) advances the state and leaves u (and
    the zero lane-padding) untouched.  Shape: (insize_pad, insize_pad).
    """
    nx, nu = A.shape[0], B.shape[1]
    insize = nx + nu
    Wtop = jnp.concatenate([A.T, B.T], axis=0)               # (insize, nx)
    Waug = jnp.zeros((insize, insize), dtype=jnp.float32).at[:, :nx].set(Wtop)
    insize_pad = _round_up(insize, _LANE)
    if insize_pad != insize:
        Waug = jnp.pad(Waug, ((0, insize_pad - insize),
                              (0, insize_pad - insize)))
    return Waug.astype(dtype)


# --------------------------------------------------------------------------
# Kernels
# --------------------------------------------------------------------------

def _ode_rhs_kernel(x_ref, w_ref, o_ref):
    # One batch-tile of the linear ODE RHS: o = x_tile @ W (MXU, f32 accum).
    # W's block index is constant -> it stays VMEM-resident across grid steps.
    a = x_ref[...]
    b = w_ref[...]
    if a.dtype != b.dtype:          # bf16-W option: cast x tile, f32 accum
        a = a.astype(b.dtype)
    o_ref[...] = jnp.dot(a, b, preferred_element_type=jnp.float32
                         ).astype(o_ref.dtype)


def _fused_euler_kernel(x_ref, w_ref, o_ref, *, n_steps, h, insize):
    # N Euler steps fused into one kernel: the augmented state z = [x|u|0-pad]
    # lives in vregs/VMEM for the whole rollout; Waug is loaded once.
    tb = x_ref.shape[0]
    f_pad = w_ref.shape[0]
    w = w_ref[...].astype(jnp.float32)
    z0 = x_ref[...].astype(jnp.float32)
    if f_pad > insize:
        z0 = jnp.concatenate(
            [z0, jnp.zeros((tb, f_pad - insize), jnp.float32)], axis=1)

    def step(_, z):
        dz = jnp.dot(z, w, preferred_element_type=jnp.float32)
        return z + h * dz

    zf = jax.lax.fori_loop(0, n_steps, step, z0, unroll=n_steps <= 32)
    o_ref[...] = zf.astype(o_ref.dtype)


# --------------------------------------------------------------------------
# Tile sizing / VMEM budgeting
# --------------------------------------------------------------------------

def _pick_batch_tile(batch, per_row_bytes, resident_bytes, vmem_budget_bytes):
    """Largest sublane-aligned batch tile whose working set fits the budget,
    capped so the grid has >= 2 tiles whenever batch permits (keeps both v7x
    TensorCores busy on the 'parallel' axis; on v5e/v6e bigger is better and
    the budget is the only cap)."""
    avail = max(vmem_budget_bytes - resident_bytes, 0)
    tb_budget = max(_SUBLANE, (avail // per_row_bytes) // _SUBLANE * _SUBLANE)
    tb_two_tiles = _round_up(max(-(-batch // 2), 1), _SUBLANE)
    return max(_SUBLANE, min(tb_budget, tb_two_tiles))


def _vmem_limit(resident_bytes, per_row_bytes, tb):
    # Derived from the actual buffers (+2x slack), clamped to a range that is
    # safe on every generation (v7x physical VMEM = 64 MiB).
    needed = resident_bytes + tb * per_row_bytes
    return int(min(max(2 * needed, 4 << 20), 48 << 20))


# --------------------------------------------------------------------------
# Wrappers
# --------------------------------------------------------------------------

def linear_ode_system_forward(x, W, nx, *, vmem_budget_bytes=24 << 20,
                              trim=True):
    """Pallas implementation of ODESystem.forward for a linear ODE RHS.

    x:  (batch, insize) with insize = nx + nu
    W:  precomputed lane-padded weight from build_ode_weight (insize, nx_pad)
    nx: number of state dims (outsize)

    Returns dx/dt.
      trim=True  -> (batch, nx)      module-exact semantics.
      trim=False -> (batch, nx_pad)  fast path: no extra HBM copy; cols >= nx
                                     are zero (keep this form when the result
                                     feeds an integrator/loss).
    """
    assert x.ndim == 2, "ODESystem.forward requires a 2-D input"
    batch, insize = x.shape
    insize_w, nx_pad = W.shape
    assert insize == insize_w, "x feature dim must match W rows (nx + nu)"
    assert nx <= nx_pad

    xsz = jnp.dtype(x.dtype).itemsize
    wsz = jnp.dtype(W.dtype).itemsize
    # W is constant across grid steps; its (small) default double-buffer is
    # accounted for here.  (pl.Buffered(1) would halve it if W grows large.)
    resident = 2 * insize * nx_pad * wsz
    per_row = 2 * insize * xsz + 2 * nx_pad * xsz   # double-buffered x + out
    tb = _pick_batch_tile(batch, per_row, resident, vmem_budget_bytes)
    grid = (pl.cdiv(batch, tb),)                    # partial last block OK

    cost = pl.CostEstimate(
        flops=2 * batch * insize * nx_pad,
        transcendentals=0,
        bytes_accessed=batch * insize * xsz + insize * nx_pad * wsz
        + batch * nx_pad * xsz,
    )

    out = pl.pallas_call(
        _ode_rhs_kernel,
        out_shape=jax.ShapeDtypeStruct((batch, nx_pad), x.dtype),
        grid=grid,
        in_specs=[
            pl.BlockSpec((tb, insize), lambda i: (i, 0)),
            pl.BlockSpec((insize, nx_pad), lambda i: (0, 0)),  # VMEM-resident
        ],
        out_specs=pl.BlockSpec((tb, nx_pad), lambda i: (i, 0)),
        compiler_params=pltpu.CompilerParams(
            dimension_semantics=("parallel",),
            vmem_limit_bytes=_vmem_limit(resident, per_row, tb),
        ),
        cost_estimate=cost,
    )(x, W)

    return out[:, :nx] if trim else out


def fused_euler_rollout(x, Waug, nx, h, n_steps, *, vmem_budget_bytes=24 << 20,
                        trim=True):
    """N explicit-Euler steps of dx/dt = A x + B u fused into ONE pallas_call
    (the highest-value perf item: launch + DMA cost amortized over n_steps).

    x:    (batch, insize) initial [x_state | u]; u is zero-order held.
    Waug: (insize_pad, insize_pad) from build_euler_weight.
    Returns the state after n_steps.
      trim=True  -> (batch, nx)
      trim=False -> (batch, insize_pad) padded augmented state (fast path).
    """
    assert x.ndim == 2
    batch, insize = x.shape
    f_pad = Waug.shape[0]
    assert Waug.shape == (f_pad, f_pad) and f_pad >= insize and nx <= insize

    xsz = jnp.dtype(x.dtype).itemsize
    wsz = jnp.dtype(Waug.dtype).itemsize
    resident = 2 * f_pad * f_pad * wsz
    # double-buffered x + out tiles, plus the live f32 iterate z.
    per_row = 2 * insize * xsz + 2 * f_pad * xsz + f_pad * 4
    tb = _pick_batch_tile(batch, per_row, resident, vmem_budget_bytes)
    grid = (pl.cdiv(batch, tb),)

    cost = pl.CostEstimate(
        flops=int(n_steps) * (2 * batch * f_pad * f_pad + 2 * batch * f_pad),
        transcendentals=0,
        bytes_accessed=batch * insize * xsz + f_pad * f_pad * wsz
        + batch * f_pad * xsz,
    )

    kernel = functools.partial(
        _fused_euler_kernel, n_steps=int(n_steps), h=float(h), insize=insize)

    out = pl.pallas_call(
        kernel,
        out_shape=jax.ShapeDtypeStruct((batch, f_pad), x.dtype),
        grid=grid,
        in_specs=[
            pl.BlockSpec((tb, insize), lambda i: (i, 0)),
            pl.BlockSpec((f_pad, f_pad), lambda i: (0, 0)),   # VMEM-resident
        ],
        out_specs=pl.BlockSpec((tb, f_pad), lambda i: (i, 0)),
        compiler_params=pltpu.CompilerParams(
            dimension_semantics=("parallel",),
            vmem_limit_bytes=_vmem_limit(resident, per_row, tb),
        ),
        cost_estimate=cost,
    )(x, Waug)

    return out[:, :nx] if trim else out


# --------------------------------------------------------------------------
# References + demo
# --------------------------------------------------------------------------

def reference_forward(x, A, B):
    nx = A.shape[0]
    xs, u = x[:, :nx], x[:, nx:]
    return xs @ A.T + u @ B.T


def reference_euler(x, A, B, h, n_steps):
    nx = A.shape[0]
    xs, u = x[:, :nx], x[:, nx:]
    for _ in range(n_steps):
        xs = xs + h * (xs @ A.T + u @ B.T)
    return xs


if __name__ == "__main__":
    key = jax.random.PRNGKey(0)
    nx, nu = 32, 16          # outsize = 32, insize = 48
    insize = nx + nu
    batch = 64

    kx, ka, kb = jax.random.split(key, 3)
    x = jax.random.normal(kx, (batch, insize), dtype=jnp.float32)
    A = 0.1 * jax.random.normal(ka, (nx, nx), dtype=jnp.float32)
    B = 0.1 * jax.random.normal(kb, (nx, nu), dtype=jnp.float32)

    # ---- ODESystem.forward (single RHS evaluation, module semantics) ----
    W = build_ode_weight(A, B)               # hoisted: built once per model
    jax.block_until_ready(W)
    dx = linear_ode_system_forward(x, W, nx)
    jax.block_until_ready(dx)
    ref_dx = reference_forward(x, A, B)
    assert dx.shape == (batch, nx)
    assert jnp.allclose(dx, ref_dx, atol=1e-5, rtol=1e-5)

    # ---- fused integrator rollout (N steps inside one kernel) ----
    h, n_steps = 0.01, 16
    Waug = build_euler_weight(A, B)          # hoisted: built once per model
    jax.block_until_ready(Waug)
    xs_T = fused_euler_rollout(x, Waug, nx, h, n_steps)
    jax.block_until_ready(xs_T)
    ref_xs_T = reference_euler(x, A, B, h, n_steps)
    assert xs_T.shape == (batch, nx)
    assert jnp.allclose(xs_T, ref_xs_T, atol=1e-4, rtol=1e-4)

    print("KERNEL_OK")
</pallas_src>

<mosaic_0001>
module attributes {stable_mosaic.version = 11 : i64} {
  func.func @_ode_rhs_kernel(%arg0: i32, %arg1: memref<32x48xf32, #tpu.memory_space<vmem>>, %arg2: memref<48x128xf32, #tpu.memory_space<vmem>>, %arg3: memref<32x128xf32, #tpu.memory_space<vmem>>) attributes {dimension_semantics = [#tpu.dimension_semantics<parallel>], iteration_bounds = array<i64: 2>, scalar_prefetch = 0 : i64, scratch_operands = 0 : i64, tpu.core_type = #tpu.core_type<tc>, window_params = [{transform_indices = @transform_0, window_bounds = array<i64: 32, 48>}, {pipeline_mode = #tpu.pipeline_mode<synchronous>, transform_indices = @transform_1, window_bounds = array<i64: 48, 128>}, {transform_indices = @transform_2, window_bounds = array<i64: 32, 128>}]} {
    %c0 = arith.constant 0 : index
    %c0_0 = arith.constant 0 : index
    %0 = vector.load %arg1[%c0, %c0_0] : memref<32x48xf32, #tpu.memory_space<vmem>>, vector<32x48xf32>
    %c0_1 = arith.constant 0 : index
    %c0_2 = arith.constant 0 : index
    %1 = vector.load %arg2[%c0_1, %c0_2] : memref<48x128xf32, #tpu.memory_space<vmem>>, vector<48x128xf32>
    %cst = arith.constant dense<0.000000e+00> : vector<32x128xf32>
    %2 = tpu.matmul %0, %1, %cst {dimension_numbers = #tpu.dot_dimension_numbers<[1], [0], [0], [1], [0, 0, 1, 1], [], []>} : vector<32x48xf32>, vector<48x128xf32>, vector<32x128xf32> -> vector<32x128xf32>
    %c0_3 = arith.constant 0 : index
    %c0_4 = arith.constant 0 : index
    %3 = vector.load %arg3[%c0_3, %c0_4] : memref<32x128xf32, #tpu.memory_space<vmem>>, vector<32x128xf32>
    tpu.vector_store %arg3[%c0_3, %c0_4], %2 {strides = array<i32>} : memref<32x128xf32, #tpu.memory_space<vmem>>, vector<32x128xf32>,
    return
  }
  func.func @transform_0(%arg0: i32) -> (i32, i32) {
    %c0_i32 = arith.constant 0 : i32
    %c0_i32_0 = arith.constant 0 : i32
    return %arg0, %c0_i32 : i32, i32
  }
  func.func @transform_1(%arg0: i32) -> (i32, i32) {
    %c0_i32 = arith.constant 0 : i32
    %c0_i32_0 = arith.constant 0 : i32
    %c0_i32_1 = arith.constant 0 : i32
    return %c0_i32, %c0_i32_0 : i32, i32
  }
  func.func @transform_2(%arg0: i32) -> (i32, i32) {
    %c0_i32 = arith.constant 0 : i32
    %c0_i32_0 = arith.constant 0 : i32
    return %arg0, %c0_i32 : i32, i32
  }
}

</mosaic_0001>

<bundles_post_ra>
// kernel: tpu_custom_call.1
= control target key start
LH: loop header
LB: loop body
LE: loop exit
PB: predicated region body
PF: predicated region fallthrough
CT: control target
= control target key end

     0   :  { %7 = vsyncpa [#allocation3], 0  ;;  %s630_s0 = inlined_call_operand.vmem [shape: f32[64,48], index: 0, kind: input, shape index: {}]   ;;  %s631_s1 = inlined_call_operand.vmem [shape: f32[48,128], index: 1, kind: input, shape index: {}]   ;;  %s632_s2 = inlined_call_operand.hbm [shape: f32[64,128], index: 2, kind: output, shape index: {}]  }
   0x1   :  { %9 = vsyncpa [#allocation3 + $0x1], 0  ;;  %s511_s9 = smov 0   ;;  %s513_s10 = smov 0  }
   0x2   :  { %s515_s11 = smov 0   ;;  %s517_s12 = smov 0  }
   0x3 LB: > { %s532_s13 = sadd.s32 4294967295, %s491_s12   ;;  %s333_s14 = sadd.s32 4294967294, %s491_s12   ;;  %s491_s12 = sphi %s517_s12, %s638_s12   ;;  %s487_s11 = sphi %s515_s11, %s637_s11   ;;  %s483_s10 = sphi %s513_s10, %s636_s10   ;;  %s479_s9 = sphi %s511_s9, %s635_s9  }
   0x4   : > { %s536_s15 = sadd.s32 1, %s491_s12   ;;  %s69_s16 = sadd.s32 1, %s487_s11 }
   0x5   : > { %s66_s17 = ssub.s32 %s491_s12, %s536_s15  ;;  %p79_p0 = scmp.ne.s32.totalorder %s487_s11, %s483_s10 }
   0x6   : > { %p67_p1 = scmp.eq.s32.totalorder %s66_s17, 0  ;;  %p80_p2 = scmp.eq.s32.totalorder %s532_s13, 1 }
   0x7   : > { %p85_p3 = scmp.ne.s32.totalorder %s483_s10, %s479_s9  ;;  %p86_p4 = scmp.eq.s32.totalorder %s333_s14, 1 }
   0x8   : > { %s547_s18 = scalar_select %p67_p1, %s487_s11, %s69_s16  }
   0x9   : > { %p549_p5 = por %p80_p2, %p79_p0  ;;  %p553_p6 = por %p86_p4, %p85_p3 }
   0xa   : > { %p336_p7 = scmp.ge.s32.totalorder %s491_s12, 1  ;;  %p116_p8 = scmp.lt.s32.totalorder %s491_s12, 3 }
   0xc   : > { %p117_p9 = pnand %p336_p7, %p116_p8 }
   0xd   : > { %s338_s25 = sshll.u32 (!%p117_p9), %s532_s13, 2  ;;  %s135_s16 = sand.u32 (!%p117_p9), 1, %s483_s10  }
   0xe   : > { %120 = sbr.rel (%p117_p9) target bundleno = 242 (0xf2), region = 28  ;;  %p139_p10 = scmp.lt.s32.totalorder (!%p117_p9), %s338_s25, 7 }
   0xf   : > { %s337_s17 = sshll.u32 (!%p117_p9), %s135_s16, 5  ;;  %s349_s23 = sshll.u32 (!%p117_p9), %s532_s13, 9 }
  0x10   : > { %s137_s21 = scalar_lea.vmem (!%p117_p9), [#allocation2], %s337_s17  ;;  %s588_s26 = scalar_lea.hbm (!%p117_p9), %s632_s2, %s349_s23 }
  0x11   : > { %s271_s22 = sshll.u32 (!%p117_p9), %s137_s21, 4  ;;  %s590_s27 = scalar_lea.sflag (!%p117_p9), [#allocation3], %s135_s16  ;;  %s583_s22 = int_to_ptr.vmem [resolvable:$true] %s271_s22 }
  0x12   : > { %s431_s13 = scalar_lea.vmem (!%p117_p9), %s583_s22, 512  ;;  %s493_s28 = smov (!%p117_p9), [#allocation2]  }
  0x13   : > { %v154_v0 = vld [vmem:[%s631_s1 + $0x28] sm:$0xff]  ;;  %v153_v1 = vld [vmem:[%s631_s1 + $0x20] sm:$0xff]  ;;  %v152_v2 = vld [vmem:[%s631_s1 + $0x18] sm:$0xff]  ;;  %s640_s25 = smov (!%p139_p10, %s338_s25), 7  ;;  %vm155_vm0 = vcmask 392192   ;;  %p432_p11 = scmp.ne.s32.totalorder %s583_s22, %s431_s13 }
  0x14   : > { %360 = vmatprep.subr.mxu0 %v154_v0  ;;  %378 = vmatprep.subr.mxu1 %v154_v0  ;;  %v151_v3 = vld [vmem:[%s631_s1 + $0x10] sm:$0xff]  ;;  %s339_s30 = sshll.u32 %s640_s25, 3  ;;  %v150_v4 = vld [vmem:[%s631_s1 + $0x8] sm:$0xff]  ;;  %v149_v5 = vld [vmem:[%s631_s1] sm:$0xff]  ;;  %s435_s29 = sshll.u32 %s493_s28, 4  ;;  %s436_s29 = int_to_ptr.vmem [resolvable:$false] %s435_s29 }
  0x15   : > { %361 = vmatpush3.msra.mxu0 %v154_v0  ;;  %384 = vmatpush3.msra.mxu1 %v154_v0  ;;  %s142_s7 = scalar_lea.vmem %s630_s0, %s339_s30  ;;  %p433_p12 = pnand %p432_p11, %p549_p5 }
  0x16   : > { %362 = vmatprep.subr.mxu0 %v153_v1  ;;  %379 = vmatprep.subr.mxu1 %v153_v1  ;;  %v145_v6 = vld [vmem:[%s142_s7] sm:$0xff]  ;;  %v147_v7 = vld [vmem:[%s142_s7 + $0x10] sm:$0xff]  ;;  %v146_v8 = vld [vmem:[%s142_s7 + $0x8] sm:$0xff]  ;;  %s437_s30 = scalar_lea.vmem %s436_s29, 1024  ;;  %p438_p0 = scmp.lt.s32.totalorder %s583_s22, %s436_s29 }
  0x17   : > { %363 = vmatpush3.msra.mxu0 %v153_v1  ;;  %385 = vmatpush3.msra.mxu1 %v153_v1  ;;  %v148_v9 = vld [vmem:[%s142_s7 + $0x18] sm:$0xff]  ;;  %p434_p13 = pneg %p433_p12  ;;  %p439_p1 = scmp.lt.s32.totalorder %s437_s30, %s431_s13 }
  0x18   : > { %364 = vmatprep.subr.mxu0 %v152_v2  ;;  %380 = vmatprep.subr.mxu1 %v152_v2 }
  0x19   : > { %365 = vmatpush3.msra.mxu0 %v152_v2  ;;  %386 = vmatpush3.msra.mxu1 %v152_v2  ;;  %p440_p2 = por %p439_p1, %p438_p0 }
  0x1a   : > { %366 = vmatprep.subr.mxu0 %v151_v3  ;;  %381 = vmatprep.subr.mxu1 %v151_v3 }
  0x1b   : > { %367 = vmatpush3.msra.mxu0 %v151_v3  ;;  %387 = vmatpush3.msra.mxu1 %v151_v3  ;;  %p441_p3 = pnand %p440_p2, %p434_p13 }
  0x1c   : > { %368 = vmatprep.subr.mxu0 %v150_v4  ;;  %382 = vmatprep.subr.mxu1 %v150_v4 }
  0x1d   : > { %369 = vmatpush3.msra.mxu0 %v150_v4  ;;  %388 = vmatpush3.msra.mxu1 %v150_v4 }
  0x1e   : > { %370 = vmatprep.subr.mxu0 %v149_v5  ;;  %383 = vmatprep.subr.mxu1 %v149_v5 }
  0x1f   : > { %371 = vmatpush3.msra.mxu0 %v149_v5  ;;  %389 = vmatpush3.msra.mxu1 %v149_v5 }
  0x20   : > { %372 = vmatprep.mubr.msk.f32.mxu0 %vm155_vm0, %v145_v6  ;;  %375 = vmatprep.mubr.msk.f32.mxu1 %vm155_vm0, %v147_v7 }
  0x21   : > { %373 = vmatmul.mubr.msk.f32.vlgmr.msra.gmra.mxu0 %vm155_vm0, %v146_v8  ;;  %376 = vmatmul.mubr.msk.f32.vlgmr.msra.gmra.mxu1 %vm155_vm0, %v148_v9 }
  0xe1   : > { %v374_v10 = vpop.f32.mrf.mxu0  ;;  %v377_v11 = vpop.f32.mrf.mxu1 }
  0xe2   : > { %254 = vst [vmem:[%s137_s21 + $0x8] sm:$0xff] %v374_v10  ;;  %256 = vst [vmem:[%s137_s21 + $0x18] sm:$0xff] %v377_v11 }
  0xe3   : > { %v234_v12 = vpop.f32.mrf.mxu0  ;;  %v244_v13 = vpop.f32.mrf.mxu1 }
  0xe4   : > { %253 = vst [vmem:[%s137_s21] sm:$0xff] %v234_v12  ;;  %255 = vst [vmem:[%s137_s21 + $0x10] sm:$0xff] %v244_v13 }
  0xe5   : > { %444 = shalt.err (!%p441_p3)
}
  0xe6   : > { %s445_s3 = scalar_lea.hbm %s588_s26, 512  ;;  %s449_s6 = scalar_lea.hbm %s632_s2, 1024 }
  0xe7   : > { %p446_p4 = scmp.ne.s32.totalorder %s588_s26, %s445_s3  ;;  %p450_p9 = scmp.lt.s32.totalorder %s588_s26, %s632_s2 }
  0xe8   : > { %p451_p10 = scmp.lt.s32.totalorder %s449_s6, %s445_s3 }
  0xe9   : > { %p447_p7 = pnand %p446_p4, %p549_p5 }
  0xea   : > { %p452_p11 = por %p451_p10, %p450_p9 }
  0xeb   : > { %p448_p8 = pneg %p447_p7 }
  0xed   : > { %p453_p12 = pnand %p452_p11, %p448_p8 }
  0xef   : > { %456 = shalt.err (!%p453_p12)
}
  0xf0   : > { %s494_s14 = smov 128   ;;  %s495_s16 = smov 8  }
  0xf1   : > { %390 = dma.vmem_to_hbm [thread:$0]  (%p549_p5), %s583_s22, 512, %s588_s26, %s590_s27, %s494_s14, %s494_s14, %s495_s16  }
  0xf2 PF: > { %p396_p13 = scmp.ge.s32.totalorder %s491_s12, 2  ;;  %s286_s17 = sand.u32 1, %s479_s9  }
  0xf3   : > { %s287_s21 = scalar_lea.sflag [#allocation3], %s286_s17 }
  0xf4   : > { %p393_p0 = pnand %p396_p13, %p553_p6 }
  0xf6   : > { %p394_p1 = pneg %p393_p0 }
  0xf8   : > { %474 = dma.done.wait (%p394_p1), %s287_s21, 512  }
  0xf9   : > { %476 = vsyncadd (%p394_p1), %s287_s21, 4294966784  ;;  %p12_p2 = scmp.ge.s32.totalorder %s536_s15, 4   ;;  %s635_s9 = smov %s483_s10 }
  0xfa   : > { %s636_s10 = smov %s487_s11  ;;  %s637_s11 = smov %s547_s18 }
  0xfb   : > { %s638_s12 = smov %s536_s15  ;;  %14 = sbr.rel (!%p12_p2) target bundleno = 3 (0x3), region = 63 }
 0x100   :  { %292 = vsyncpa [#allocation3], 1 }
 0x101   :  { %294 = vsyncpa [#allocation3 + $0x1], 1 }

</bundles_post_ra>
